<compile_context>
chip_gen: v7x
topology: tpu7x:2x2x1
jax: 0.10.0
libtpu: 0.0.40
codegen_flags: <defaults>
</compile_context>

<pallas_src>
import math

import jax
import jax.numpy as jnp
from jax.experimental import pallas as pl
from jax.experimental.pallas import tpu as pltpu

BN_EPS = 1e-5
ACT_DTYPE = jnp.bfloat16
_LANE = 128


def _round_up(x, m):
    return ((x + m - 1) // m) * m


def _cdiv(a, b):
    return (a + b - 1) // b


_VMEM_LIMIT = None


def _vmem_limit_bytes():
    """v5e/v6e (128 MiB physical VMEM) -> 64 MiB scoped; v7x (64 MiB) -> 32 MiB."""
    global _VMEM_LIMIT
    if _VMEM_LIMIT is None:
        try:
            cap = int(pltpu.get_tpu_info().vmem_capacity_bytes)
            _VMEM_LIMIT = int(min(64 * 1024 * 1024,
                                  max(16 * 1024 * 1024, cap // 2)))
        except Exception:
            _VMEM_LIMIT = 32 * 1024 * 1024
    return _VMEM_LIMIT


def _mosaic_params(*sem):
    return pltpu.CompilerParams(dimension_semantics=tuple(sem),
                                vmem_limit_bytes=_vmem_limit_bytes())


def _row_tile(M, C, bytes_per_elem=2, target_bytes=4 << 20):
    """Row tile for (M, C) streaming kernels: big blocks (amortize per-step
    overhead) but at least 2 grid steps when M allows (v7x megacore)."""
    max_rows = max(8, (target_bytes // (max(C, 1) * bytes_per_elem)) // 8 * 8)
    half = max(8, _round_up(_cdiv(M, 2), 8))
    cap = min(max_rows, half)
    for t in (8192, 4096, 2048, 1024, 512, 256, 128, 64, 32, 16, 8):
        if t <= cap and M % t == 0:
            return t, M
    tm = min(cap, 512)
    return tm, _round_up(M, tm)


# ----------------------------------------------------------------------------
# Pallas kernels
# ----------------------------------------------------------------------------

def _make_matmul_kernel(k_take):
    """bf16 x bf16 matmul, f32 VMEM-scratch accumulation, bf16 store in the
    last-k epilogue which also emits merged per-channel (sum, sumsq)."""
    def kernel(a_ref, b_ref, o_ref, sq_ref, acc_ref):
        k = pl.program_id(1)

        @pl.when(k == 0)
        def _():
            acc_ref[...] = jnp.zeros_like(acc_ref)

        a = a_ref[...]
        if k_take is not None:
            a = a[:, :k_take]                 # drop zero-padded input channels
        acc_ref[...] += jnp.dot(a, b_ref[...],
                                preferred_element_type=jnp.float32)

        @pl.when(k == pl.num_programs(1) - 1)
        def _():
            y = acc_ref[...]
            o_ref[...] = y.astype(o_ref.dtype)          # bf16, lane-dense
            sq_ref[0, 0:1, :] = jnp.sum(y, axis=0, keepdims=True)
            sq_ref[0, 1:2, :] = jnp.sum(y * y, axis=0, keepdims=True)
    return kernel


def pallas_conv_matmul(a, w, k_take=None):
    """a: (M, Ka) bf16 rows, w: (Kw, OCp) bf16 with OCp % 128 == 0.
    If k_take is given, only the first k_take columns of `a` are contracted
    (the rest are channel padding).  Returns (out (M, OCp) bf16, sum, sumsq)."""
    M, Ka = a.shape
    Kw, OCp = w.shape
    assert OCp % _LANE == 0
    if k_take is not None:
        assert Kw == k_take and k_take < Ka and Ka <= 2304
    else:
        assert Kw == Ka

    # M tiling: >=2 parallel steps when possible (v7x: 2 TCs), <=512 rows/block.
    tm = max(8, _round_up(_cdiv(M, 2), 8)) if M <= 1024 else 512
    Mp = _round_up(M, tm)
    gm = Mp // tm
    a_p = a if Mp == M else jnp.pad(a, ((0, Mp - M), (0, 0)))

    if k_take is not None or Ka <= 2304:
        gk = 1
        b_p = w
        a_spec = pl.BlockSpec((tm, Ka), lambda i, k: (i, 0))
        b_spec = pl.BlockSpec((Kw, OCp), lambda i, k: (0, 0))
    else:                                      # rare fallback: K-tiled reduce
        tk = 512
        Kp = _round_up(Ka, tk)
        gk = Kp // tk
        a_p = jnp.pad(a_p, ((0, 0), (0, Kp - Ka))) if Kp != Ka else a_p
        b_p = jnp.pad(w, ((0, Kp - Ka), (0, 0))) if Kp != Ka else w
        a_spec = pl.BlockSpec((tm, tk), lambda i, k: (i, k))
        b_spec = pl.BlockSpec((tk, OCp), lambda i, k: (k, 0))

    out, sq = pl.pallas_call(
        _make_matmul_kernel(k_take),
        out_shape=(jax.ShapeDtypeStruct((Mp, OCp), ACT_DTYPE),
                   jax.ShapeDtypeStruct((gm, 2, OCp), jnp.float32)),
        grid_spec=pltpu.PrefetchScalarGridSpec(
            num_scalar_prefetch=0,
            grid=(gm, gk),
            in_specs=[a_spec, b_spec],
            out_specs=(pl.BlockSpec((tm, OCp), lambda i, k: (i, 0)),
                       pl.BlockSpec((1, 2, OCp), lambda i, k: (i, 0, 0))),
            scratch_shapes=[pltpu.VMEM((tm, OCp), jnp.float32)]),
        compiler_params=_mosaic_params("parallel", "arbitrary"),
    )(a_p, b_p)
    if Mp != M:
        out = out[:M]
    return out, sq[:, 0, :].sum(axis=0), sq[:, 1, :].sum(axis=0)


def _make_conv3x3_kernel(OH, OW, stride, cin, carried, ocp, out_dtype):
    """Direct 3x3 conv: streams the (phase-split) padded input once and runs
    the 9 tap matmuls in-kernel with f32 accumulation (no HBM im2col)."""
    n_in = 1 if stride == 1 else 4

    def kernel(*refs):
        x_refs = refs[:n_in]
        w_ref = refs[n_in]
        o_ref = refs[n_in + 1]
        sq_ref = refs[n_in + 2]
        s_acc = jnp.zeros((1, ocp), jnp.float32)
        q_acc = jnp.zeros((1, ocp), jnp.float32)
        for oh in range(OH):                     # static unroll (OH is small)
            row = jnp.zeros((OW, ocp), jnp.float32)
            for kh in range(3):
                for kw in range(3):
                    if stride == 1:
                        a = x_refs[0][0, oh + kh, kw:kw + OW, :]
                    else:
                        ph = x_refs[(kh % 2) * 2 + (kw % 2)]
                        a = ph[0, oh + kh // 2, (kw // 2):(kw // 2) + OW, :]
                    if cin < carried:
                        a = a[:, :cin]           # drop zero-padded channels
                    row += jnp.dot(a, w_ref[kh * 3 + kw],
                                   preferred_element_type=jnp.float32)
            o_ref[0, oh, :, :] = row.astype(out_dtype)
            s_acc += jnp.sum(row, axis=0, keepdims=True)
            q_acc += jnp.sum(row * row, axis=0, keepdims=True)
        sq_ref[0, 0:1, :] = s_acc
        sq_ref[0, 1:2, :] = q_acc
    return kernel


def conv3x3_direct(x, cp):
    N, H, W, carried = x.shape
    cin, ocp, stride = cp["cin"], cp["ocp"], cp["stride"]
    if stride == 1:
        OH, OW = H, W
        xp = jnp.pad(x, ((0, 0), (1, 1), (1, 1), (0, 0)))
        inputs = [xp]
        PH, PW = H + 2, W + 2
    else:  # stride 2, pad 1: split the padded input into 4 stride-2 phases so
        #   every tap is a contiguous (stride-1) window inside the kernel.
        OH, OW = (H - 1) // 2 + 1, (W - 1) // 2 + 1
        Hp2, Wp2 = 2 * OH + 2, 2 * OW + 2
        xp = jnp.pad(x, ((0, 0), (1, Hp2 - H - 1), (1, Wp2 - W - 1), (0, 0)))
        inputs = [xp[:, a::2, b::2, :] for a in (0, 1) for b in (0, 1)]
        PH, PW = OH + 1, OW + 1

    w3 = cp["w"].reshape(9, cin, ocp)            # free (contiguous) reshape
    in_specs = [pl.BlockSpec((1, PH, PW, carried), lambda n: (n, 0, 0, 0))
                for _ in inputs]
    in_specs.append(pl.BlockSpec((9, cin, ocp), lambda n: (0, 0, 0)))
    out, sq = pl.pallas_call(
        _make_conv3x3_kernel(OH, OW, stride, cin, carried, ocp, ACT_DTYPE),
        out_shape=(jax.ShapeDtypeStruct((N, OH, OW, ocp), ACT_DTYPE),
                   jax.ShapeDtypeStruct((N, 2, ocp), jnp.float32)),
        grid=(N,),
        in_specs=in_specs,
        out_specs=(pl.BlockSpec((1, OH, OW, ocp), lambda n: (n, 0, 0, 0)),
                   pl.BlockSpec((1, 2, ocp), lambda n: (n, 0, 0))),
        compiler_params=_mosaic_params("parallel"),
    )(*inputs, w3)
    return out, sq[:, 0, :].sum(axis=0), sq[:, 1, :].sum(axis=0)


def _make_bn_kernel(relu, has_residual):
    if has_residual:
        def kernel(x_ref, s_ref, b_ref, r_ref, o_ref):
            y = (x_ref[...].astype(jnp.float32) * s_ref[...] + b_ref[...]
                 + r_ref[...].astype(jnp.float32))
            if relu:
                y = jnp.maximum(y, 0.0)
            o_ref[...] = y.astype(o_ref.dtype)
    else:
        def kernel(x_ref, s_ref, b_ref, o_ref):
            y = x_ref[...].astype(jnp.float32) * s_ref[...] + b_ref[...]
            if relu:
                y = jnp.maximum(y, 0.0)
            o_ref[...] = y.astype(o_ref.dtype)
    return kernel


def pallas_bn_act(x2d, scale, shift, relu=False, residual=None):
    """y = x * scale + shift [+ residual] [then ReLU]; bf16 in / bf16 out."""
    M, C = x2d.shape
    tm, Mp = _row_tile(M, C, bytes_per_elem=2)
    xp = x2d if Mp == M else jnp.pad(x2d, ((0, Mp - M), (0, 0)))
    args = [xp, scale.reshape(1, C), shift.reshape(1, C)]
    in_specs = [pl.BlockSpec((tm, C), lambda i: (i, 0)),
                pl.BlockSpec((1, C), lambda i: (0, 0)),
                pl.BlockSpec((1, C), lambda i: (0, 0))]
    if residual is not None:
        rp = residual if Mp == M else jnp.pad(residual, ((0, Mp - M), (0, 0)))
        args.append(rp)
        in_specs.append(pl.BlockSpec((tm, C), lambda i: (i, 0)))
    out = pl.pallas_call(
        _make_bn_kernel(relu, residual is not None),
        out_shape=jax.ShapeDtypeStruct((Mp, C), ACT_DTYPE),
        grid=(Mp // tm,),
        in_specs=in_specs,
        out_specs=pl.BlockSpec((tm, C), lambda i: (i, 0)),
        compiler_params=_mosaic_params("parallel"),
    )(*args)
    return out if Mp == M else out[:M]


def _make_maxpool_kernel(OH, OW):
    def kernel(p00, p01, p10, p11, o_ref):
        phases = (p00, p01, p10, p11)
        acc = None
        for kh in range(3):
            for kw in range(3):
                v = phases[(kh % 2) * 2 + (kw % 2)][
                    0, (kh // 2):(kh // 2) + OH, (kw // 2):(kw // 2) + OW, :]
                acc = v if acc is None else jnp.maximum(acc, v)
        o_ref[0] = acc
    return kernel


def maxpool_3x3_s2_p1(x):
    """MaxPool2d(3, 2, 1): input streamed once (4 stride-2 phases), 9-tap max
    computed in-kernel."""
    N, H, W, C = x.shape
    OH, OW = (H - 1) // 2 + 1, (W - 1) // 2 + 1
    Hp2, Wp2 = 2 * OH + 2, 2 * OW + 2
    xp = jnp.pad(x, ((0, 0), (1, Hp2 - H - 1), (1, Wp2 - W - 1), (0, 0)),
                 constant_values=-jnp.inf)
    phases = [xp[:, a::2, b::2, :] for a in (0, 1) for b in (0, 1)]
    PH, PW = OH + 1, OW + 1
    return pl.pallas_call(
        _make_maxpool_kernel(OH, OW),
        out_shape=jax.ShapeDtypeStruct((N, OH, OW, C), x.dtype),
        grid=(N,),
        in_specs=[pl.BlockSpec((1, PH, PW, C), lambda n: (n, 0, 0, 0))] * 4,
        out_specs=pl.BlockSpec((1, OH, OW, C), lambda n: (n, 0, 0, 0)),
        compiler_params=_mosaic_params("parallel"),
    )(*phases)


def _avgpool_kernel(x_ref, o_ref):
    o_ref[...] = jnp.mean(x_ref[...].astype(jnp.float32), axis=1,
                          keepdims=True)


def pallas_global_avgpool(x3d):
    """x3d: (N, H*W, C) bf16 -> (N, C) f32 mean over spatial."""
    N, HW, C = x3d.shape
    out = pl.pallas_call(
        _avgpool_kernel,
        out_shape=jax.ShapeDtypeStruct((N, 1, C), jnp.float32),
        grid=(N,),
        in_specs=[pl.BlockSpec((1, HW, C), lambda n: (n, 0, 0))],
        out_specs=pl.BlockSpec((1, 1, C), lambda n: (n, 0, 0)),
        compiler_params=_mosaic_params("parallel"),
    )(x3d)
    return out.reshape(N, C)


# ----------------------------------------------------------------------------
# NN building blocks (glue around the kernels)
# ----------------------------------------------------------------------------

def _conv_im2col(x, cp):
    """Fallback path (7x7 stem conv / unusual geometries): bf16 im2col + matmul."""
    N, H, W, carried = x.shape
    KH, KW, stride, pad = cp["kh"], cp["kw"], cp["stride"], cp["pad"]
    cin, ocp = cp["cin"], cp["ocp"]
    xs = x if cin == carried else x[..., :cin]
    xp = jnp.pad(xs, ((0, 0), (pad, pad), (pad, pad), (0, 0)))
    Hp, Wp = H + 2 * pad, W + 2 * pad
    OH = (Hp - KH) // stride + 1
    OW = (Wp - KW) // stride + 1
    cols = [xp[:, kh:kh + stride * (OH - 1) + 1:stride,
                kw:kw + stride * (OW - 1) + 1:stride, :]
            for kh in range(KH) for kw in range(KW)]
    a = jnp.concatenate(cols, axis=-1).reshape(N * OH * OW, KH * KW * cin)
    out, s, q = pallas_conv_matmul(a, cp["w"])
    return out.reshape(N, OH, OW, ocp), s, q


def conv2d(x, cp):
    """x: NHWC bf16 (channels possibly zero-padded to 128k).  Returns the conv
    output (N, OH, OW, OCp) bf16 plus per-channel (sum, sumsq) for BN."""
    N, H, W, carried = x.shape
    KH, KW = cp["kh"], cp["kw"]
    cin, ocp, stride, pad = cp["cin"], cp["ocp"], cp["stride"], cp["pad"]
    if KH == 1 and KW == 1 and pad == 0:
        xs = x if stride == 1 else x[:, ::stride, ::stride, :]
        OH, OW = xs.shape[1], xs.shape[2]
        a = xs.reshape(N * OH * OW, carried)
        out, s, q = pallas_conv_matmul(
            a, cp["w"], k_take=cin if cin < carried else None)
        return out.reshape(N, OH, OW, ocp), s, q
    if KH == 3 and KW == 3 and pad == 1 and stride in (1, 2) and cin <= carried:
        OH = H if stride == 1 else (H - 1) // 2 + 1
        OW = W if stride == 1 else (W - 1) // 2 + 1
        blk_bytes = ((H + 3) * (W + 3) * carried + 9 * cin * ocp
                     + OH * OW * ocp) * 2
        if OH <= 16 and blk_bytes * 2 <= (8 << 20):
            return conv3x3_direct(x, cp)
    return _conv_im2col(x, cp)


def batchnorm_apply(x4d, ch_sum, ch_sq, bn, relu=False, residual=None):
    """Training-mode BatchNorm2d (batch statistics, biased variance) using the
    per-channel sums produced by the conv kernels (no extra stats pass)."""
    gamma, beta = bn
    N, H, W, C = x4d.shape
    M = N * H * W
    mean = ch_sum / M
    var = jnp.maximum(ch_sq / M - mean * mean, 0.0)   # clamp cancellation noise
    scale = gamma * jax.lax.rsqrt(var + BN_EPS)
    shift = beta - mean * scale
    r2 = residual.reshape(M, C) if residual is not None else None
    y = pallas_bn_act(x4d.reshape(M, C), scale, shift, relu=relu, residual=r2)
    return y.reshape(N, H, W, C)


def bottleneck_forward(x, p):
    out, s, q = conv2d(x, p["conv1"])                       # 1x1
    out = batchnorm_apply(out, s, q, p["bn1"], relu=True)
    out, s, q = conv2d(out, p["conv2"])                     # 3x3 (stride s)
    out = batchnorm_apply(out, s, q, p["bn2"], relu=True)
    out, s, q = conv2d(out, p["conv3"])                     # 1x1
    if p["down"] is not None:
        identity, sd, qd = conv2d(x, p["down"])
        identity = batchnorm_apply(identity, sd, qd, p["down_bn"], relu=False)
    else:
        identity = x
    # bn3 -> + identity -> relu, fused in one Pallas elementwise kernel.
    out = batchnorm_apply(out, s, q, p["bn3"], relu=True, residual=identity)
    return out


def forward_backbone(x_nchw, params):
    x = jnp.transpose(x_nchw, (0, 2, 3, 1)).astype(ACT_DTYPE)  # NCHW -> NHWC bf16
    # ConstantPad2d(1, 0) + conv1(padding=2) folded into one pad=3 conv.
    x, s, q = conv2d(x, params["conv1"])
    x = batchnorm_apply(x, s, q, params["bn1"], relu=True)
    x = maxpool_3x3_s2_p1(x)
    for lname in ("layer1", "layer2", "layer3", "layer4"):
        for blk in params[lname]:
            x = bottleneck_forward(x, blk)
    N, H, W, C = x.shape
    feats = pallas_global_avgpool(x.reshape(N, H * W, C))       # avgpool+flatten
    return feats[:, :params["feat_dim"]]                        # crop channel pad


def resnet_forward(inputs, params):
    """Mirrors ResNet.forward: group consecutive crops of equal last-dim size,
    run the backbone per group, concatenate along batch."""
    if not isinstance(inputs, (list, tuple)):
        inputs = [inputs]
    sizes = [int(inp.shape[-1]) for inp in inputs]
    boundaries, i, n = [], 0, len(sizes)
    while i < n:
        j = i
        while j < n and sizes[j] == sizes[i]:
            j += 1
        boundaries.append(j)
        i = j
    outs, start = [], 0
    for end in boundaries:
        xcat = jnp.concatenate(list(inputs[start:end]), axis=0)
        outs.append(forward_backbone(xcat, params))
        start = end
    return jnp.concatenate(outs, axis=0)


# ----------------------------------------------------------------------------
# Parameter construction (deterministic, mirrors ResNet.__init__ shapes/init)
# ----------------------------------------------------------------------------

def _make_conv(key, kh, kw, cin, cout, stride=1, pad=0):
    fan_out = kh * kw * cout                      # kaiming_normal_(mode='fan_out')
    std = math.sqrt(2.0 / fan_out)
    w = std * jax.random.normal(key, (kh, kw, cin, cout), jnp.float32)
    ocp = _round_up(cout, _LANE)                  # lane-dense OC (review item 2)
    w2 = w.reshape(kh * kw * cin, cout)
    if ocp != cout:
        w2 = jnp.pad(w2, ((0, 0), (0, ocp - cout)))
    return {"w": w2.astype(ACT_DTYPE),
            "kh": kh, "kw": kw, "cin": cin, "oc": cout, "ocp": ocp,
            "stride": stride, "pad": pad}


def _bn_init(c):
    cp_ = _round_up(c, _LANE)
    gamma = jnp.pad(jnp.ones((c,), jnp.float32), (0, cp_ - c))  # pad with 0
    beta = jnp.zeros((cp_,), jnp.float32)
    return (gamma, beta)


def make_resnet_params(key, layers=(1, 1, 1, 1), width_per_group=16, widen=1):
    """Bottleneck ResNet (expansion=4), groups=1."""
    expansion = 4
    keys = iter(jax.random.split(key, 256))
    inplanes = width_per_group * widen
    params = {
        # pad=3 == ConstantPad2d(1, 0) followed by conv padding=2 (both zero pads)
        "conv1": _make_conv(next(keys), 7, 7, 3, inplanes, stride=2, pad=3),
        "bn1": _bn_init(inplanes),
    }
    num = width_per_group * widen
    layer_planes = [num, num * 2, num * 4, num * 8]
    layer_strides = [1, 2, 2, 2]
    for li, (planes, nblocks, lstride) in enumerate(
            zip(layer_planes, layers, layer_strides)):
        blocks = []
        for bi in range(nblocks):
            s = lstride if bi == 0 else 1
            width = int(planes * (width_per_group / 64.0)) * 1  # groups=1
            blk = {"conv1": _make_conv(next(keys), 1, 1, inplanes, width),
                   "bn1": _bn_init(width),
                   "conv2": _make_conv(next(keys), 3, 3, width, width,
                                       stride=s, pad=1),
                   "bn2": _bn_init(width),
                   "conv3": _make_conv(next(keys), 1, 1, width,
                                       planes * expansion),
                   "bn3": _bn_init(planes * expansion)}
            if bi == 0 and (s != 1 or inplanes != planes * expansion):
                blk["down"] = _make_conv(next(keys), 1, 1, inplanes,
                                         planes * expansion, stride=s)
                blk["down_bn"] = _bn_init(planes * expansion)
            else:
                blk["down"] = None
                blk["down_bn"] = None
            inplanes = planes * expansion
            blocks.append(blk)
        params[f"layer{li + 1}"] = blocks
    params["feat_dim"] = inplanes
    return params


# TODO(synk): forward_head / forward_sechead / projection & prototype heads and
# l2norm are never reached by ResNet.forward (it only calls forward_backbone),
# so they are not implemented; BN running-stat buffers are not tracked (they do
# not affect the training-mode forward output).

if __name__ == "__main__":
    key = jax.random.PRNGKey(0)
    x = jax.random.normal(key, (2, 3, 32, 32), jnp.float32)  # NCHW, like PyTorch

    params = make_resnet_params(jax.random.PRNGKey(42),
                                layers=(1, 1, 1, 1), width_per_group=16)

    out = resnet_forward(x, params)
    out = jax.block_until_ready(out)

    assert out.shape == (2, 512), out.shape
    assert bool(jnp.all(jnp.isfinite(out)))
    print("KERNEL_OK")
</pallas_src>

<mosaic_0001>
module attributes {stable_mosaic.version = 11 : i64} {
  func.func @kernel(%arg0: i32, %arg1: i32, %arg2: memref<256x147xbf16, #tpu.memory_space<vmem>>, %arg3: memref<147x128xbf16, #tpu.memory_space<vmem>>, %arg4: memref<256x128xbf16, #tpu.memory_space<vmem>>, %arg5: memref<1x2x128xf32, #tpu.memory_space<vmem>>, %arg6: memref<256x128xf32, #tpu.memory_space<vmem>>) attributes {dimension_semantics = [#tpu.dimension_semantics<parallel>, #tpu.dimension_semantics<arbitrary>], iteration_bounds = array<i64: 2, 1>, scalar_prefetch = 0 : i64, scratch_operands = 1 : i64, tpu.core_type = #tpu.core_type<tc>, window_params = [{transform_indices = @transform_0, window_bounds = array<i64: 256, 147>}, {pipeline_mode = #tpu.pipeline_mode<synchronous>, transform_indices = @transform_1, window_bounds = array<i64: 147, 128>}, {transform_indices = @transform_2, window_bounds = array<i64: 256, 128>}, {transform_indices = @transform_3, window_bounds = array<i64: 1, 2, 128>}]} {
    %c0_i32 = arith.constant 0 : i32
    %0 = arith.cmpi eq, %arg1, %c0_i32 : i32
    %1 = arith.extui %0 : i1 to i32
    %c0_i32_0 = arith.constant 0 : i32
    %2 = arith.cmpi ne, %1, %c0_i32_0 : i32
    scf.if %2 {
      %cst_10 = arith.constant 0.000000e+00 : f32
      %12 = vector.broadcast %cst_10 : f32 to vector<256x128xf32>
      %c0_11 = arith.constant 0 : index
      %c0_12 = arith.constant 0 : index
      %13 = vector.load %arg6[%c0_11, %c0_12] : memref<256x128xf32, #tpu.memory_space<vmem>>, vector<256x128xf32>
      tpu.vector_store %arg6[%c0_11, %c0_12], %12 {strides = array<i32>} : memref<256x128xf32, #tpu.memory_space<vmem>>, vector<256x128xf32>,
    } else {
    }
    %c0 = arith.constant 0 : index
    %c0_1 = arith.constant 0 : index
    %3 = vector.load %arg2[%c0, %c0_1] : memref<256x147xbf16, #tpu.memory_space<vmem>>, vector<256x147xbf16>
    %c0_2 = arith.constant 0 : index
    %c0_3 = arith.constant 0 : index
    %4 = vector.load %arg6[%c0_2, %c0_3] : memref<256x128xf32, #tpu.memory_space<vmem>>, vector<256x128xf32>
    %c0_4 = arith.constant 0 : index
    %c0_5 = arith.constant 0 : index
    %5 = vector.load %arg3[%c0_4, %c0_5] : memref<147x128xbf16, #tpu.memory_space<vmem>>, vector<147x128xbf16>
    %cst = arith.constant dense<0.000000e+00> : vector<256x128xf32>
    %6 = tpu.matmul %3, %5, %cst {dimension_numbers = #tpu.dot_dimension_numbers<[1], [0], [0], [1], [0, 0, 1, 1], [], []>} : vector<256x147xbf16>, vector<147x128xbf16>, vector<256x128xf32> -> vector<256x128xf32>
    %7 = arith.addf %4, %6 : vector<256x128xf32>
    %c0_6 = arith.constant 0 : index
    %c0_7 = arith.constant 0 : index
    %8 = vector.load %arg6[%c0_6, %c0_7] : memref<256x128xf32, #tpu.memory_space<vmem>>, vector<256x128xf32>
    tpu.vector_store %arg6[%c0_6, %c0_7], %7 {strides = array<i32>} : memref<256x128xf32, #tpu.memory_space<vmem>>, vector<256x128xf32>,
    %c0_i32_8 = arith.constant 0 : i32
    %9 = arith.cmpi eq, %arg1, %c0_i32_8 : i32
    %10 = arith.extui %9 : i1 to i32
    %c0_i32_9 = arith.constant 0 : i32
    %11 = arith.cmpi ne, %10, %c0_i32_9 : i32
    scf.if %11 {
      %c0_10 = arith.constant 0 : index
      %c0_11 = arith.constant 0 : index
      %12 = vector.load %arg6[%c0_10, %c0_11] : memref<256x128xf32, #tpu.memory_space<vmem>>, vector<256x128xf32>
      %13 = arith.truncf %12 : vector<256x128xf32> to vector<256x128xbf16>
      %c0_12 = arith.constant 0 : index
      %c0_13 = arith.constant 0 : index
      %14 = vector.load %arg4[%c0_12, %c0_13] : memref<256x128xbf16, #tpu.memory_space<vmem>>, vector<256x128xbf16>
      tpu.vector_store %arg4[%c0_12, %c0_13], %13 {strides = array<i32>} : memref<256x128xbf16, #tpu.memory_space<vmem>>, vector<256x128xbf16>,
      %cst_14 = arith.constant dense<0.000000e+00> : vector<128xf32>
      %15 = vector.multi_reduction <add>, %12, %cst_14 [0] : vector<256x128xf32> to vector<128xf32>
      %16 = vector.shape_cast %15 : vector<128xf32> to vector<1x128xf32>
      %c0_15 = arith.constant 0 : index
      %c0_16 = arith.constant 0 : index
      %c0_17 = arith.constant 0 : index
      %17 = vector.load %arg5[%c0_15, %c0_16, %c0_17] : memref<1x2x128xf32, #tpu.memory_space<vmem>>, vector<1x1x128xf32>
      %18 = vector.shape_cast %17 : vector<1x1x128xf32> to vector<1x128xf32>
      %19 = vector.shape_cast %16 : vector<1x128xf32> to vector<1x1x128xf32>
      tpu.vector_store %arg5[%c0_15, %c0_16, %c0_17], %19 {strides = array<i32>} : memref<1x2x128xf32, #tpu.memory_space<vmem>>, vector<1x1x128xf32>,
      %20 = arith.mulf %12, %12 : vector<256x128xf32>
      %cst_18 = arith.constant dense<0.000000e+00> : vector<128xf32>
      %21 = vector.multi_reduction <add>, %20, %cst_18 [0] : vector<256x128xf32> to vector<128xf32>
      %22 = vector.shape_cast %21 : vector<128xf32> to vector<1x128xf32>
      %c0_19 = arith.constant 0 : index
      %c1 = arith.constant 1 : index
      %c0_20 = arith.constant 0 : index
      %23 = vector.load %arg5[%c0_19, %c1, %c0_20] : memref<1x2x128xf32, #tpu.memory_space<vmem>>, vector<1x1x128xf32>
      %24 = vector.shape_cast %23 : vector<1x1x128xf32> to vector<1x128xf32>
      %25 = vector.shape_cast %22 : vector<1x128xf32> to vector<1x1x128xf32>
      tpu.vector_store %arg5[%c0_19, %c1, %c0_20], %25 {strides = array<i32>} : memref<1x2x128xf32, #tpu.memory_space<vmem>>, vector<1x1x128xf32>,
    } else {
    }
    return
  }
  func.func @transform_0(%arg0: i32, %arg1: i32) -> (i32, i32) {
    %c0_i32 = arith.constant 0 : i32
    %c0_i32_0 = arith.constant 0 : i32
    return %arg0, %c0_i32 : i32, i32
  }
  func.func @transform_1(%arg0: i32, %arg1: i32) -> (i32, i32) {
    %c0_i32 = arith.constant 0 : i32
    %c0_i32_0 = arith.constant 0 : i32
    %c0_i32_1 = arith.constant 0 : i32
    return %c0_i32, %c0_i32_0 : i32, i32
  }
  func.func @transform_2(%arg0: i32, %arg1: i32) -> (i32, i32) {
    %c0_i32 = arith.constant 0 : i32
    %c0_i32_0 = arith.constant 0 : i32
    return %arg0, %c0_i32 : i32, i32
  }
  func.func @transform_3(%arg0: i32, %arg1: i32) -> (i32, i32, i32) {
    %c0_i32 = arith.constant 0 : i32
    %c0_i32_0 = arith.constant 0 : i32
    %c0_i32_1 = arith.constant 0 : i32
    return %arg0, %c0_i32, %c0_i32_0 : i32, i32, i32
  }
}

</mosaic_0001>

<bundles_post_ra>
// kernel: tpu_custom_call.1
= control target key start
LH: loop header
LB: loop body
LE: loop exit
PB: predicated region body
PF: predicated region fallthrough
CT: control target
= control target key end

     0   :  { %9 = vsyncpa [#allocation4], 0  ;;  %s2100_s0 = inlined_call_operand.vmem [shape: bf16[512,147], index: 0, kind: input, shape index: {}]   ;;  %s2101_s1 = inlined_call_operand.vmem [shape: bf16[147,128], index: 1, kind: input, shape index: {}]   ;;  %s2102_s2 = inlined_call_operand.hbm [shape: bf16[512,128], index: 2, kind: output, shape index: {0}]   ;;  %s2103_s3 = inlined_call_operand.hbm [shape: f32[2,2,128], index: 3, kind: output, shape index: {1}]  }
   0x1   :  { %11 = vsyncpa [#allocation4 + $0x1], 0 }
   0x2   :  { %12 = vsyncpa [#allocation6], 0 }
   0x3   :  { %14 = vsyncpa [#allocation6 + $0x1], 0  ;;  %s1753_s12 = smov 0   ;;  %s1755_s13 = smov 0  }
   0x4   :  { %s1757_s14 = smov 0   ;;  %s1759_s15 = smov 0  }
   0x5   :  { %s1761_s16 = smov 0   ;;  %s1763_s17 = smov 0  }
   0x6 LB: > { %s1237_s18 = sadd.s32 4294967295, %s1725_s17   ;;  %s1238_s19 = sadd.s32 4294967294, %s1725_s17   ;;  %s1725_s17 = sphi %s1763_s17, %s20_s17   ;;  %s1721_s16 = sphi %s1761_s16, %s2110_s16   ;;  %s1717_s15 = sphi %s1759_s15, %s2109_s15   ;;  %s1713_s14 = sphi %s1757_s14, %s2108_s14   ;;  %s1709_s13 = sphi %s1755_s13, %s2107_s13   ;;  %s1705_s12 = sphi %s1753_s12, %s2106_s12  }
   0x7   : > { %s32_s20 = sadd.s32 1, %s1721_s16  ;;  %s86_s21 = sadd.s32 1, %s1713_s14 }
   0x8   : > { %p34_p0 = scmp.ge.s32.totalorder %s32_s20, 2  ;;  %p96_p1 = scmp.ne.s32.totalorder %s1713_s14, %s1709_s13 }
   0x9   : > { %p97_p2 = scmp.eq.s32.totalorder %s1237_s18, 1  ;;  %p102_p3 = scmp.ne.s32.totalorder %s1709_s13, %s1705_s12 }
   0xa   : > { %s2112_s20 = smov (%p34_p0, %s32_s20), 0  ;;  %p103_p5 = scmp.eq.s32.totalorder %s1238_s19, 1 }
   0xb   : > { %p1793_p4 = por %p97_p2, %p96_p1  ;;  %s83_s23 = ssub.s32 %s1721_s16, %s2112_s20 }
   0xc   : > { %p1241_p6 = scmp.ge.s32.totalorder %s1725_s17, 1  ;;  %p84_p7 = scmp.eq.s32.totalorder %s83_s23, 0 }
   0xd   : > { %p1800_p8 = por %p103_p5, %p102_p3  ;;  %p160_p9 = scmp.lt.s32.totalorder %s1725_s17, 3 }
   0xe   : > { %s1806_s25 = scalar_select %p84_p7, %s1713_s14, %s86_s21  }
   0xf   : > { %p161_p10 = pnand %p1241_p6, %p160_p9 }
  0x10   : > { %v1557_v0 = vld [vmem:[%s2101_s1] sm:$0xff] (!%p161_p10)   ;;  %v1727_v1 = vmov (!%p161_p10), 0   ;;  %v1558_v2 = vld [vmem:[%s2101_s1 + $0x8] sm:$0xff] (!%p161_p10)   ;;  %v1559_v3 = vld [vmem:[%s2101_s1 + $0x10] sm:$0xff] (!%p161_p10)   ;;  %s1818_s5 = sshll.u32 (!%p161_p10), %s1717_s15, 5  ;;  %vm519_vm0 = vcmask (!%p161_p10), 154624  }
  0x11   : > { %164 = sbr.rel (%p161_p10) target bundleno = 400 (0x190), region = 28  ;;  %575 = vmatprep.subr.bf16.mxu0 (!%p161_p10), %v1727_v1  ;;  %1473 = vmatprep.subr.bf16.mxu1 (!%p161_p10), %v1727_v1  ;;  %p191_p11 = scmp.lt.s32.totalorder (!%p161_p10), %s1818_s5, 63  ;;  %v1560_v4 = vld [vmem:[%s2101_s1 + $0x18] sm:$0xff] (!%p161_p10)   ;;  %v1561_v5 = vld [vmem:[%s2101_s1 + $0x20] sm:$0xff] (!%p161_p10)   ;;  %v1562_v7 = vld [vmem:[%s2101_s1 + $0x28] sm:$0xff] (!%p161_p10)   ;;  %vm568_vm1 = vcmask (!%p161_p10), 1040384  }
  0x12   : > { %576 = vmatpush1.bf16.msra.mxu0 (!%p161_p10), %v1557_v0  ;;  %1483 = vmatpush1.bf16.msra.mxu1 (!%p161_p10), %v1557_v0  ;;  %v1563_v9 = vld [vmem:[%s2101_s1 + $0x30] sm:$0xff] (!%p161_p10)   ;;  %v1564_v10 = vld [vmem:[%s2101_s1 + $0x38] sm:$0xff] (!%p161_p10)   ;;  %vm569_vm2 = vcmask (!%p161_p10), 1041408   ;;  %v1728_v11 = vmov (!%p161_p10), 65535   ;;  %v1565_v13 = vld [vmem:[%s2101_s1 + $0x40] sm:$0xff] (!%p161_p10)   ;;  %s1729_s28 = smov (!%p161_p10), [#allocation3]  }
  0x13   : > { %577 = vmatprep.subr.bf16.mxu0 (!%p161_p10), %v1727_v1  ;;  %1474 = vmatprep.subr.bf16.mxu1 (!%p161_p10), %v1727_v1  ;;  %v570_v12 = vsel (!%p161_p10), %vm568_vm1, 4294967295, %v1728_v11  ;;  %v1566_v14 = vld [vmem:[%s2101_s1 + $0x48] ss:$0 sps:$4 sm:$0x33] (!%p161_p10)   ;;  %s1619_s29 = sshll.u32 (!%p161_p10), %s1729_s28, 4  ;;  %s1620_s29 = int_to_ptr.vmem [resolvable:$false] %s1619_s29 }
  0x14   : > { %v571_v15 = vsel (!%p161_p10), %vm569_vm2, %v570_v12, 0  ;;  %s1621_s30 = scalar_lea.vmem (!%p161_p10), %s1620_s29, 4096 }
  0x15   : > { %v573_v16 = vand.u32 (!%p161_p10), %v1566_v14, %v571_v15 }
  0x16   : > { %578 = vmatpush1.bf16.msra.mxu0 (!%p161_p10), %v1558_v2  ;;  %1484 = vmatpush1.bf16.msra.mxu1 (!%p161_p10), %v1558_v2 }
  0x17   : > { %579 = vmatprep.subr.bf16.mxu0 (!%p161_p10), %v1727_v1  ;;  %1475 = vmatprep.subr.bf16.mxu1 (!%p161_p10), %v1727_v1 }
  0x18   : > { %s192_s6 = scalar_select %p191_p11, %s1818_s5, 63 }
  0x1a   : > { %580 = vmatpush1.bf16.msra.mxu0 %v1559_v3  ;;  %1485 = vmatpush1.bf16.msra.mxu1 %v1559_v3  ;;  %s1344_s9 = sshll.u32 %s192_s6, 3 }
  0x1b   : > { %581 = vmatprep.subr.bf16.mxu0 %v1727_v1  ;;  %1476 = vmatprep.subr.bf16.mxu1 %v1727_v1  ;;  %s1828_s18 = scalar_lea.vmem %s2100_s0, %s1344_s9  ;;  %s1897_s9 = sand.u32 1, %s1709_s13  }
  0x1c   : > { %v1569_v6 = vld [vmem:[%s1828_s18 + $0x4] ss:$8 sps:$4 sm:$0xff]   ;;  %v1567_v17 = vld [vmem:[%s1828_s18] ss:$8 sps:$4 sm:$0xff]   ;;  %v1570_v19 = vld [vmem:[%s1828_s18 + $0x14] ss:$8 sps:$4 sm:$0xff]  }
  0x1d   : > { %1289 = vmatprep.mubr.msk.bf16.mxu0 %vm519_vm0, %v1569_v6  ;;  %v1581_v8 = vld [vmem:[%s1828_s18 + $0x84] ss:$8 sps:$4 sm:$0xff]   ;;  %v1579_v18 = vld [vmem:[%s1828_s18 + $0x80] ss:$8 sps:$4 sm:$0xff]   ;;  %v1585_v20 = vld [vmem:[%s1828_s18 + $0x94] ss:$8 sps:$4 sm:$0xff]  }
  0x1e   : > { %582 = vmatpush1.bf16.msra.mxu0 %v1560_v4  ;;  %1486 = vmatpush1.bf16.msra.mxu1 %v1560_v4  ;;  %v1572_v21 = vld [vmem:[%s1828_s18 + $0x10] ss:$8 sps:$4 sm:$0xff]   ;;  %v1573_v23 = vld [vmem:[%s1828_s18 + $0x24] ss:$8 sps:$4 sm:$0xff]   ;;  %v1575_v25 = vld [vmem:[%s1828_s18 + $0x20] ss:$8 sps:$4 sm:$0xff]  }
  0x1f   : > { %583 = vmatprep.subr.bf16.mxu0 %v1727_v1  ;;  %1477 = vmatprep.subr.bf16.mxu1 %v1727_v1  ;;  %v1587_v22 = vld [vmem:[%s1828_s18 + $0x90] ss:$8 sps:$4 sm:$0xff]   ;;  %v1591_v24 = vld [vmem:[%s1828_s18 + $0xa4] ss:$8 sps:$4 sm:$0xff]   ;;  %v1593_v26 = vld [vmem:[%s1828_s18 + $0xa0] ss:$8 sps:$4 sm:$0xff]  }
  0x20   : > { %1297 = vmatprep.mubr.msk.bf16.mxu1 %vm519_vm0, %v1581_v8  ;;  %v1576_v27 = vld [vmem:[%s1828_s18 + $0x34] ss:$8 sps:$4 sm:$0xff]   ;;  %v1578_v29 = vld [vmem:[%s1828_s18 + $0x30] ss:$8 sps:$4 sm:$0xff]   ;;  %v1582_v31 = vld [vmem:[%s1828_s18 + $0x44] ss:$8 sps:$4 sm:$0xff]  }
  0x21   : > { %v1597_v28 = vld [vmem:[%s1828_s18 + $0xb4] ss:$8 sps:$4 sm:$0xff]   ;;  %v1599_v30 = vld [vmem:[%s1828_s18 + $0xb0] ss:$8 sps:$4 sm:$0xff]   ;;  %v1603_v32 = vld [vmem:[%s1828_s18 + $0xc4] ss:$8 sps:$4 sm:$0xff]  }
  0x22   : > { %584 = vmatpush1.bf16.msra.mxu0 %v1561_v5  ;;  %1487 = vmatpush1.bf16.msra.mxu1 %v1561_v5  ;;  %v1584_v33 = vld [vmem:[%s1828_s18 + $0x40] ss:$8 sps:$4 sm:$0xff]   ;;  %v1588_v35 = vld [vmem:[%s1828_s18 + $0x54] ss:$8 sps:$4 sm:$0xff]   ;;  %v1590_v37 = vld [vmem:[%s1828_s18 + $0x50] ss:$8 sps:$4 sm:$0xff]  }
  0x23   : > { %585 = vmatprep.subr.bf16.mxu0 %v1727_v1  ;;  %1478 = vmatprep.subr.bf16.mxu1 %v1727_v1  ;;  %v1605_v34 = vld [vmem:[%s1828_s18 + $0xc0] ss:$8 sps:$4 sm:$0xff]   ;;  %v1606_v36 = vld [vmem:[%s1828_s18 + $0xd4] ss:$8 sps:$4 sm:$0xff]   ;;  %v1608_v38 = vld [vmem:[%s1828_s18 + $0xd0] ss:$8 sps:$4 sm:$0xff]  }
  0x24   : > { %v1594_v39 = vld [vmem:[%s1828_s18 + $0x64] ss:$8 sps:$4 sm:$0xff]   ;;  %v1596_v41 = vld [vmem:[%s1828_s18 + $0x60] ss:$8 sps:$4 sm:$0xff]   ;;  %v1600_v43 = vld [vmem:[%s1828_s18 + $0x74] ss:$8 sps:$4 sm:$0xff]  }
  0x25   : > { %v1609_v40 = vld [vmem:[%s1828_s18 + $0xe4] ss:$8 sps:$4 sm:$0xff]   ;;  %v1611_v42 = vld [vmem:[%s1828_s18 + $0xe0] ss:$8 sps:$4 sm:$0xff]   ;;  %v1612_v44 = vld [vmem:[%s1828_s18 + $0xf4] ss:$8 sps:$4 sm:$0xff]  }
  0x26   : > { %586 = vmatpush1.bf16.msra.mxu0 %v1562_v7  ;;  %1488 = vmatpush1.bf16.msra.mxu1 %v1562_v7  ;;  %v1602_v45 = vld [vmem:[%s1828_s18 + $0x70] ss:$8 sps:$4 sm:$0xff]   ;;  %s1242_s10 = sshll.u32 %s1897_s9, 7  ;;  %s1104_s26 = scalar_lea.sflag [#allocation4], %s1897_s9 }
  0x27   : > { %587 = vmatprep.subr.bf16.mxu0 %v1727_v1  ;;  %1479 = vmatprep.subr.bf16.mxu1 %v1727_v1  ;;  %v1614_v46 = vld [vmem:[%s1828_s18 + $0xf0] ss:$8 sps:$4 sm:$0xff]   ;;  %s1906_s11 = scalar_lea.vmem [#allocation3], %s1242_s10  ;;  %s1377_s18 = sshll.u32 %s1717_s15, 11 }
  0x28   : > { %s1122_s19 = sshll.u32 %s1906_s11, 4  ;;  %s1967_s23 = scalar_lea.hbm %s2102_s2, %s1377_s18  ;;  %s1969_s19 = int_to_ptr.vmem [resolvable:$true] %s1122_s19 }
  0x29   : > { %s1615_s27 = scalar_lea.vmem %s1969_s19, 2048  ;;  %p1622_p1 = scmp.lt.s32.totalorder %s1969_s19, %s1620_s29 }
  0x2a   : > { %588 = vmatpush1.bf16.msra.mxu0 %v1563_v9  ;;  %1489 = vmatpush1.bf16.msra.mxu1 %v1563_v9  ;;  %p1616_p12 = scmp.ne.s32.totalorder %s1969_s19, %s1615_s27  ;;  %p1623_p2 = scmp.lt.s32.totalorder %s1621_s30, %s1615_s27 }
  0x2b   : > { %589 = vmatprep.subr.bf16.mxu0 %v1727_v1  ;;  %1480 = vmatprep.subr.bf16.mxu1 %v1727_v1 }
  0x2c   : > { %p1617_p13 = pnand %p1616_p12, %p1793_p4  ;;  %p1624_p3 = por %p1623_p2, %p1622_p1 }
  0x2e   : > { %590 = vmatpush1.bf16.msra.mxu0 %v1564_v10  ;;  %1490 = vmatpush1.bf16.msra.mxu1 %v1564_v10  ;;  %p1618_p0 = pneg %p1617_p13 }
  0x2f   : > { %591 = vmatprep.subr.bf16.mxu0 %v1727_v1  ;;  %1481 = vmatprep.subr.bf16.mxu1 %v1727_v1 }
  0x30   : > { %p1625_p5 = pnand %p1624_p3, %p1618_p0 }
  0x32   : > { %592 = vmatpush1.bf16.msra.mxu0 %v1565_v13  ;;  %1491 = vmatpush1.bf16.msra.mxu1 %v1565_v13 }
  0x33   : > { %593 = vmatprep.subr.bf16.mxu0 %v1727_v1  ;;  %1482 = vmatprep.subr.bf16.mxu1 %v1727_v1 }
  0x36   : > { %594 = vmatpush1.bf16.msra.mxu0 %v573_v16  ;;  %1492 = vmatpush1.bf16.msra.mxu1 %v573_v16 }
  0x39   : > { %608 = vmatmul.mubr.bf16.vlgmr.msra.gmra.mrb[0].mxu0 %v1567_v17  ;;  %672 = vmatmul.mubr.bf16.vlgmr.msra.gmra.mrb[0].mxu1 %v1579_v18 }
  0x3a   : > { %1290 = vmatprep.mubr.msk.bf16.mxu0 %vm519_vm0, %v1570_v19  ;;  %1298 = vmatprep.mubr.msk.bf16.mxu1 %vm519_vm0, %v1585_v20 }
  0x41   : > { %616 = vmatmul.mubr.bf16.gmra.mrb[4].mxu0 %v1572_v21  ;;  %680 = vmatmul.mubr.bf16.gmra.mrb[4].mxu1 %v1587_v22 }
  0x42   : > { %1291 = vmatprep.mubr.msk.bf16.mxu0 %vm519_vm0, %v1573_v23  ;;  %1299 = vmatprep.mubr.msk.bf16.mxu1 %vm519_vm0, %v1591_v24 }
  0x49   : > { %624 = vmatmul.mubr.bf16.gmra.mrb[8].mxu0 %v1575_v25  ;;  %688 = vmatmul.mubr.bf16.gmra.mrb[8].mxu1 %v1593_v26 }
  0x4a   : > { %1292 = vmatprep.mubr.msk.bf16.mxu0 %vm519_vm0, %v1576_v27  ;;  %1300 = vmatprep.mubr.msk.bf16.mxu1 %vm519_vm0, %v1597_v28 }
  0x51   : > { %632 = vmatmul.mubr.bf16.gmra.mrb[12].mxu0 %v1578_v29  ;;  %696 = vmatmul.mubr.bf16.gmra.mrb[12].mxu1 %v1599_v30 }
  0x52   : > { %1293 = vmatprep.mubr.msk.bf16.mxu0 %vm519_vm0, %v1582_v31  ;;  %1301 = vmatprep.mubr.msk.bf16.mxu1 %vm519_vm0, %v1603_v32 }
  0x59   : > { %640 = vmatmul.mubr.bf16.gmra.mrb[16].mxu0 %v1584_v33  ;;  %704 = vmatmul.mubr.bf16.gmra.mrb[16].mxu1 %v1605_v34 }
  0x5a   : > { %1294 = vmatprep.mubr.msk.bf16.mxu0 %vm519_vm0, %v1588_v35  ;;  %1302 = vmatprep.mubr.msk.bf16.mxu1 %vm519_vm0, %v1606_v36 }
  0x61   : > { %648 = vmatmul.mubr.bf16.gmra.mrb[20].mxu0 %v1590_v37  ;;  %712 = vmatmul.mubr.bf16.gmra.mrb[20].mxu1 %v1608_v38 }
  0x62   : > { %1295 = vmatprep.mubr.msk.bf16.mxu0 %vm519_vm0, %v1594_v39  ;;  %1303 = vmatprep.mubr.msk.bf16.mxu1 %vm519_vm0, %v1609_v40 }
  0x69   : > { %656 = vmatmul.mubr.bf16.gmra.mrb[24].mxu0 %v1596_v41  ;;  %720 = vmatmul.mubr.bf16.gmra.mrb[24].mxu1 %v1611_v42 }
  0x6a   : > { %1296 = vmatprep.mubr.msk.bf16.mxu0 %vm519_vm0, %v1600_v43  ;;  %1304 = vmatprep.mubr.msk.bf16.mxu1 %vm519_vm0, %v1612_v44 }
  0x71   : > { %664 = vmatmul.mubr.bf16.gmra.mrb[28].mxu0 %v1602_v45  ;;  %728 = vmatmul.mubr.bf16.gmra.mrb[28].mxu1 %v1614_v46 }
 0x10c   : > { %v609_v47 = vpop.f32.mrb[0].mxu0  ;;  %v1900_v48 = vpop.f32.mrb[0].mxu1 }
 0x10d   : > { %v611_v49 = vpop.f32.mrb[1].mxu0  ;;  %v675_v50 = vpop.f32.mrb[1].mxu1  ;;  %v1033_v51 = vmul.f32 %v609_v47, %v609_v47 }
 0x10e   : > { %v612_v52 = vpop.f32.mrb[2].mxu0  ;;  %v1902_v53 = vpop.f32.mrb[2].mxu1 }
 0x10f   : > { %v1381_v54 = vpack.c.bf16 %v612_v52, %v609_v47  ;;  %v995_v55 = vadd.f32 %v612_v52, %v609_v47  ;;  %v1034_v56 = vmul.f32 %v612_v52, %v612_v52  ;;  %v614_v57 = vpop.f32.mrb[3].mxu0  ;;  %v1421_v58 = vpack.c.bf16 %v1902_v53, %v1900_v48  ;;  %v678_v59 = vpop.f32.mrb[3].mxu1 }
 0x111   : > { %1382 = vst [vmem:[%s1906_s11] sm:$0xff] %v1381_v54   ;;  %v1065_v60 = vadd.f32 %v1034_v56, %v1033_v51  ;;  %1465 = vst [vmem:[%s1906_s11 + $0x40] sm:$0xff] %v1421_v58  }
 0x114   : > { %v617_v61 = vpop.f32.mrb[4].mxu0  ;;  %v1910_v62 = vpop.f32.mrb[4].mxu1 }
 0x115   : > { %v996_v63 = vadd.f32 %v995_v55, %v617_v61  ;;  %v1035_v0 = vmul.f32 %v617_v61, %v617_v61  ;;  %v619_v1 = vpop.f32.mrb[5].mxu0  ;;  %v683_v2 = vpop.f32.mrb[5].mxu1 }
 0x116   : > { %v620_v3 = vpop.f32.mrb[6].mxu0  ;;  %v1912_v4 = vpop.f32.mrb[6].mxu1 }
 0x117   : > { %v1066_v5 = vadd.f32 %v1065_v60, %v1035_v0  ;;  %v1386_v6 = vpack.c.bf16 %v620_v3, %v617_v61  ;;  %v997_v7 = vadd.f32 %v996_v63, %v620_v3  ;;  %v1036_v8 = vmul.f32 %v620_v3, %v620_v3  ;;  %v622_v9 = vpop.f32.mrb[7].mxu0  ;;  %v686_v10 = vpop.f32.mrb[7].mxu1 }
 0x118   : > { %v1426_v11 = vpack.c.bf16 %v1912_v4, %v1910_v62 }
 0x119   : > { %1458 = vst [vmem:[%s1906_s11 + $0x8] sm:$0xff] %v1386_v6   ;;  %v1067_v12 = vadd.f32 %v1066_v5, %v1036_v8 }
 0x11a   : > { %1466 = vst [vmem:[%s1906_s11 + $0x48] sm:$0xff] %v1426_v11  }
 0x11c   : > { %v625_v13 = vpop.f32.mrb[8].mxu0  ;;  %v1918_v14 = vpop.f32.mrb[8].mxu1 }
 0x11d   : > { %v998_v15 = vadd.f32 %v997_v7, %v625_v13  ;;  %v1037_v16 = vmul.f32 %v625_v13, %v625_v13  ;;  %v627_v17 = vpop.f32.mrb[9].mxu0  ;;  %v691_v18 = vpop.f32.mrb[9].mxu1 }
 0x11e   : > { %v628_v19 = vpop.f32.mrb[10].mxu0  ;;  %v1920_v20 = vpop.f32.mrb[10].mxu1 }
 0x11f   : > { %v1068_v21 = vadd.f32 %v1067_v12, %v1037_v16  ;;  %v1391_v22 = vpack.c.bf16 %v628_v19, %v625_v13  ;;  %v999_v23 = vadd.f32 %v998_v15, %v628_v19  ;;  %v1038_v24 = vmul.f32 %v628_v19, %v628_v19  ;;  %v630_v25 = vpop.f32.mrb[11].mxu0  ;;  %v694_v26 = vpop.f32.mrb[11].mxu1 }
 0x120   : > { %v1431_v27 = vpack.c.bf16 %v1920_v20, %v1918_v14 }
 0x121   : > { %1459 = vst [vmem:[%s1906_s11 + $0x10] sm:$0xff] %v1391_v22   ;;  %v1069_v28 = vadd.f32 %v1068_v21, %v1038_v24 }
 0x122   : > { %1467 = vst [vmem:[%s1906_s11 + $0x50] sm:$0xff] %v1431_v27  }
 0x124   : > { %v633_v29 = vpop.f32.mrb[12].mxu0  ;;  %v1926_v30 = vpop.f32.mrb[12].mxu1 }
 0x125   : > { %v1000_v31 = vadd.f32 %v999_v23, %v633_v29  ;;  %v1039_v32 = vmul.f32 %v633_v29, %v633_v29  ;;  %v635_v33 = vpop.f32.mrb[13].mxu0  ;;  %v699_v34 = vpop.f32.mrb[13].mxu1 }
 0x126   : > { %v636_v35 = vpop.f32.mrb[14].mxu0  ;;  %v1928_v36 = vpop.f32.mrb[14].mxu1 }
 0x127   : > { %v1070_v37 = vadd.f32 %v1069_v28, %v1039_v32  ;;  %v1396_v38 = vpack.c.bf16 %v636_v35, %v633_v29  ;;  %v1001_v39 = vadd.f32 %v1000_v31, %v636_v35  ;;  %v1040_v40 = vmul.f32 %v636_v35, %v636_v35  ;;  %v638_v41 = vpop.f32.mrb[15].mxu0  ;;  %v702_v42 = vpop.f32.mrb[15].mxu1 }
 0x128   : > { %v1436_v43 = vpack.c.bf16 %v1928_v36, %v1926_v30 }
 0x129   : > { %1460 = vst [vmem:[%s1906_s11 + $0x18] sm:$0xff] %v1396_v38   ;;  %v1071_v44 = vadd.f32 %v1070_v37, %v1040_v40 }
 0x12a   : > { %1468 = vst [vmem:[%s1906_s11 + $0x58] sm:$0xff] %v1436_v43  }
 0x12c   : > { %v641_v45 = vpop.f32.mrb[16].mxu0  ;;  %v1934_v46 = vpop.f32.mrb[16].mxu1 }
 0x12d   : > { %v1002_v47 = vadd.f32 %v1001_v39, %v641_v45  ;;  %v1041_v49 = vmul.f32 %v641_v45, %v641_v45  ;;  %v643_v50 = vpop.f32.mrb[17].mxu0  ;;  %v707_v51 = vpop.f32.mrb[17].mxu1 }
 0x12e   : > { %v644_v52 = vpop.f32.mrb[18].mxu0  ;;  %v1936_v54 = vpop.f32.mrb[18].mxu1 }
 0x12f   : > { %v1072_v55 = vadd.f32 %v1071_v44, %v1041_v49  ;;  %v1401_v56 = vpack.c.bf16 %v644_v52, %v641_v45  ;;  %v1003_v57 = vadd.f32 %v1002_v47, %v644_v52  ;;  %v1042_v58 = vmul.f32 %v644_v52, %v644_v52  ;;  %v646_v59 = vpop.f32.mrb[19].mxu0  ;;  %v710_v60 = vpop.f32.mrb[19].mxu1 }
 0x130   : > { %v1441_v61 = vpack.c.bf16 %v1936_v54, %v1934_v46  ;;  %v1050_v59 = vmul.f32 %v1902_v53, %v1902_v53 }
 0x131   : > { %1461 = vst [vmem:[%s1906_s11 + $0x20] sm:$0xff] %v1401_v56   ;;  %v1073_v63 = vadd.f32 %v1072_v55, %v1042_v58  ;;  %v1049_v56 = vmul.f32 %v1900_v48, %v1900_v48 }
 0x132   : > { %1469 = vst [vmem:[%s1906_s11 + $0x60] sm:$0xff] %v1441_v61  }
 0x134   : > { %v649_v0 = vpop.f32.mrb[20].mxu0  ;;  %v1942_v1 = vpop.f32.mrb[20].mxu1 }
 0x135   : > { %v1004_v2 = vadd.f32 %v1003_v57, %v649_v0  ;;  %v1043_v3 = vmul.f32 %v649_v0, %v649_v0  ;;  %v651_v5 = vpop.f32.mrb[21].mxu0  ;;  %v715_v6 = vpop.f32.mrb[21].mxu1 }
 0x136   : > { %v652_v7 = vpop.f32.mrb[22].mxu0  ;;  %v1944_v8 = vpop.f32.mrb[22].mxu1 }
 0x137   : > { %v1074_v9 = vadd.f32 %v1073_v63, %v1043_v3  ;;  %v1406_v10 = vpack.c.bf16 %v652_v7, %v649_v0  ;;  %v1005_v11 = vadd.f32 %v1004_v2, %v652_v7  ;;  %v1044_v12 = vmul.f32 %v652_v7, %v652_v7  ;;  %v654_v13 = vpop.f32.mrb[23].mxu0  ;;  %v718_v15 = vpop.f32.mrb[23].mxu1 }
 0x138   : > { %v1446_v16 = vpack.c.bf16 %v1944_v8, %v1942_v1 }
 0x139   : > { %1462 = vst [vmem:[%s1906_s11 + $0x28] sm:$0xff] %v1406_v10   ;;  %v1075_v17 = vadd.f32 %v1074_v9, %v1044_v12 }
 0x13a   : > { %1470 = vst [vmem:[%s1906_s11 + $0x68] sm:$0xff] %v1446_v16  }
 0x13c   : > { %v657_v18 = vpop.f32.mrb[24].mxu0  ;;  %v1950_v19 = vpop.f32.mrb[24].mxu1 }
 0x13d   : > { %v1006_v21 = vadd.f32 %v1005_v11, %v657_v18  ;;  %v1045_v22 = vmul.f32 %v657_v18, %v657_v18  ;;  %v659_v23 = vpop.f32.mrb[25].mxu0  ;;  %v723_v24 = vpop.f32.mrb[25].mxu1 }
 0x13e   : > { %v660_v25 = vpop.f32.mrb[26].mxu0  ;;  %v1952_v26 = vpop.f32.mrb[26].mxu1 }
 0x13f   : > { %v1076_v27 = vadd.f32 %v1075_v17, %v1045_v22  ;;  %v1411_v28 = vpack.c.bf16 %v660_v25, %v657_v18  ;;  %v1007_v29 = vadd.f32 %v1006_v21, %v660_v25  ;;  %v1046_v31 = vmul.f32 %v660_v25, %v660_v25  ;;  %v662_v32 = vpop.f32.mrb[27].mxu0  ;;  %v726_v33 = vpop.f32.mrb[27].mxu1 }
 0x140   : > { %v1451_v34 = vpack.c.bf16 %v1952_v26, %v1950_v19 }
 0x141   : > { %1463 = vst [vmem:[%s1906_s11 + $0x30] sm:$0xff] %v1411_v28   ;;  %v1077_v35 = vadd.f32 %v1076_v27, %v1046_v31 }
 0x142   : > { %1471 = vst [vmem:[%s1906_s11 + $0x70] sm:$0xff] %v1451_v34  }
 0x144   : > { %v665_v37 = vpop.f32.mrb[28].mxu0  ;;  %v1958_v38 = vpop.f32.mrb[28].mxu1 }
 0x145   : > { %v1008_v39 = vadd.f32 %v1007_v29, %v665_v37  ;;  %v1047_v40 = vmul.f32 %v665_v37, %v665_v37  ;;  %v667_v41 = vpop.f32.mrb[29].mxu0  ;;  %v731_v42 = vpop.f32.mrb[29].mxu1 }
 0x146   : > { %v668_v43 = vpop.f32.mrb[30].mxu0  ;;  %v1962_v44 = vpop.f32.mrb[30].mxu1 }
 0x147   : > { %v1078_v45 = vadd.f32 %v1077_v35, %v1047_v40  ;;  %v1416_v47 = vpack.c.bf16 %v668_v43, %v665_v37  ;;  %v1009_v49 = vadd.f32 %v1008_v39, %v668_v43  ;;  %v1048_v50 = vmul.f32 %v668_v43, %v668_v43  ;;  %v670_v51 = vpop.f32.mrb[31].mxu0  ;;  %v734_v52 = vpop.f32.mrb[31].mxu1 }
 0x148   : > { %v1456_v55 = vpack.c.bf16 %v1962_v44, %v1958_v38 }
 0x149   : > { %1464 = vst [vmem:[%s1906_s11 + $0x38] sm:$0xff] %v1416_v47   ;;  %v1010_v57 = vadd.f32 %v1009_v49, %v1900_v48  ;;  %v1079_v58 = vadd.f32 %v1078_v45, %v1048_v50 }
 0x14a   : > { %1472 = vst [vmem:[%s1906_s11 + $0x78] sm:$0xff] %v1456_v55  }
 0x14b   : > { %v1011_v60 = vadd.f32 %v1010_v57, %v1902_v53  ;;  %v1080_v61 = vadd.f32 %v1079_v58, %v1049_v56 }
 0x14c   : > { %1628 = shalt.err (!%p1625_p5)
}
 0x14d   : > { %s1629_s4 = scalar_lea.hbm %s1967_s23, 2048  ;;  %s1633_s8 = scalar_lea.hbm %s2102_s2, 4096 }
 0x14e   : > { %p1630_p6 = scmp.ne.s32.totalorder %s1967_s23, %s1629_s4  ;;  %p1634_p10 = scmp.lt.u32.totalorder %s1967_s23, %s2102_s2 }
 0x14f   : > { %p1635_p11 = scmp.lt.u32.totalorder %s1633_s8, %s1629_s4  ;;  %p1637_p13 = scmp.lt.u32.totalorder %s1629_s4, %s1967_s23 }
 0x150   : > { %p1631_p7 = pnand %p1630_p6, %p1793_p4 }
 0x151   : > { %p1636_p12 = por %p1635_p11, %p1634_p10 }
 0x152   : > { %p1632_p9 = pneg %p1631_p7 }
 0x153   : > { %p1638_p0 = por %p1637_p13, %p1636_p12 }
 0x155   : > { %p1639_p1 = pnand %p1638_p0, %p1632_p9 }
 0x157   : > { %1642 = shalt.err (!%p1639_p1)
}
 0x158   : > { %s1730_s18 = smov 64   ;;  %s1731_s21 = smov 4   ;;  %v1051_v48 = vmul.f32 %v1910_v62, %v1910_v62  ;;  %v1012_v53 = vadd.f32 %v1011_v60, %v1910_v62  ;;  %v1081_v63 = vadd.f32 %v1080_v61, %v1050_v59  ;;  %v1052_v0 = vmul.f32 %v1912_v4, %v1912_v4 }
 0x159   : > { %1493 = dma.vmem_to_hbm [thread:$0]  (%p1793_p4), %s1969_s19, 2048, %s1967_s23, %s1104_s26, %s1730_s18, %s1730_s18, %s1731_s21   ;;  %v1053_v5 = vmul.f32 %v1918_v14, %v1918_v14  ;;  %v1054_v9 = vmul.f32 %v1920_v20, %v1920_v20  ;;  %v1055_v62 = vmul.f32 %v1926_v30, %v1926_v30  ;;  %v1057_v17 = vmul.f32 %v1934_v46, %v1934_v46 }
 0x15a   : > { %v1013_v2 = vadd.f32 %v1012_v53, %v1912_v4  ;;  %v1082_v3 = vadd.f32 %v1081_v63, %v1051_v48  ;;  %v1056_v4 = vmul.f32 %v1928_v36, %v1928_v36  ;;  %v1058_v22 = vmul.f32 %v1936_v54, %v1936_v54  ;;  %s1243_s19 = sshll.u32 %s1897_s9, 1  ;;  %s2052_s28 = scalar_lea.hbm %s2103_s3, %s1818_s5 }
 0x15b   : > { %v1059_v24 = vmul.f32 %v1942_v1, %v1942_v1  ;;  %v1060_v27 = vmul.f32 %v1944_v8, %v1944_v8  ;;  %v1061_v29 = vmul.f32 %v1950_v19, %v1950_v19  ;;  %v1062_v32 = vmul.f32 %v1952_v26, %v1952_v26  ;;  %s189_s15 = scalar_lea.vmem [#allocation5], %s1243_s19  ;;  %s1109_s29 = scalar_lea.sflag [#allocation6], %s1897_s9 }
 0x15c   : > { %v1083_v6 = vadd.f32 %v1082_v3, %v1052_v0  ;;  %v1014_v7 = vadd.f32 %v1013_v2, %v1918_v14  ;;  %v1064_v37 = vmul.f32 %v1962_v44, %v1962_v44  ;;  %s1138_s23 = sshll.u32 %s189_s15, 4  ;;  %s1732_s4 = smov [#allocation5]   ;;  %s2054_s23 = int_to_ptr.vmem [resolvable:$true] %s1138_s23 }
 0x15d   : > { %s1643_s30 = scalar_lea.vmem %s2054_s23, 32  ;;  %s1647_s6 = sshll.u32 %s1732_s4, 4  ;;  %s1648_s6 = int_to_ptr.vmem [resolvable:$false] %s1647_s6 }
 0x15e   : > { %v1015_v10 = vadd.f32 %v1014_v7, %v1920_v20  ;;  %v1084_v11 = vadd.f32 %v1083_v6, %v1053_v5  ;;  %p1644_p2 = scmp.ne.s32.totalorder %s2054_s23, %s1643_s30  ;;  %s1649_s7 = scalar_lea.vmem %s1648_s6, 64 }
 0x15f   : > { %p1650_p6 = scmp.lt.s32.totalorder %s2054_s23, %s1648_s6  ;;  %p1651_p7 = scmp.lt.s32.totalorder %s1649_s7, %s1643_s30 }
 0x160   : > { %v1016_v12 = vadd.f32 %v1015_v10, %v1926_v30  ;;  %v1085_v13 = vadd.f32 %v1084_v11, %v1054_v9  ;;  %p1645_p3 = pnand %p1644_p2, %p1793_p4 }
 0x161   : > { %p1652_p9 = por %p1651_p7, %p1650_p6 }
 0x162   : > { %v1017_v15 = vadd.f32 %v1016_v12, %v1928_v36  ;;  %v1086_v16 = vadd.f32 %v1085_v13, %v1055_v62  ;;  %p1646_p5 = pneg %p1645_p3 }
 0x164   : > { %v1018_v14 = vadd.f32 %v1017_v15, %v1934_v46  ;;  %v1087_v18 = vadd.f32 %v1086_v16, %v1056_v4  ;;  %p1653_p10 = pnand %p1652_p9, %p1646_p5 }
 0x166   : > { %v1088_v20 = vadd.f32 %v1087_v18, %v1057_v17  ;;  %v1019_v21 = vadd.f32 %v1018_v14, %v1936_v54 }
 0x168   : > { %v1089_v30 = vadd.f32 %v1088_v20, %v1058_v22  ;;  %v1020_v23 = vadd.f32 %v1019_v21, %v1942_v1  ;;  %v1063_v1 = vmul.f32 %v1958_v38, %v1958_v38 }
 0x16a   : > { %v1090_v36 = vadd.f32 %v1089_v30, %v1059_v24  ;;  %v1021_v25 = vadd.f32 %v1020_v23, %v1944_v8 }
 0x16c   : > { %v1091_v46 = vadd.f32 %v1090_v36, %v1060_v27  ;;  %v1022_v28 = vadd.f32 %v1021_v25, %v1950_v19 }
 0x16e   : > { %v1092_v54 = vadd.f32 %v1091_v46, %v1061_v29  ;;  %v1023_v31 = vadd.f32 %v1022_v28, %v1952_v26 }
 0x170   : > { %v1093_v33 = vadd.f32 %v1092_v54, %v1062_v32  ;;  %v1024_v34 = vadd.f32 %v1023_v31, %v1958_v38 }
 0x172   : > { %v1094_v8 = vadd.f32 %v1093_v33, %v1063_v1  ;;  %v1025_v35 = vadd.f32 %v1024_v34, %v1962_v44 }
 0x174   : > { %v1026_v39 = vrot.slane %v1025_v35, 4  ;;  %v1095_v19 = vadd.f32 %v1094_v8, %v1064_v37 }
 0x176   : > { %v1027_v40 = vadd.f32 %v1026_v39, %v1025_v35  ;;  %v1096_v41 = vrot.slane %v1095_v19, 4 }
 0x178   : > { %v1028_v26 = vrot.slane %v1027_v40, 2  ;;  %v1097_v42 = vadd.f32 %v1096_v41, %v1095_v19 }
 0x17a   : > { %v1029_v43 = vadd.f32 %v1028_v26, %v1027_v40  ;;  %v1098_v45 = vrot.slane %v1097_v42, 2 }
 0x17c   : > { %v1030_v47 = vrot.slane %v1029_v43, 1  ;;  %v1099_v38 = vadd.f32 %v1098_v45, %v1097_v42 }
 0x17e   : > { %v1031_v49 = vadd.f32 %v1030_v47, %v1029_v43  ;;  %v1100_v50 = vrot.slane %v1099_v38, 1 }
 0x180   : > { %1032 = vst [vmem:[%s189_s15] sm:$0x1] %v1031_v49  ;;  %v1101_v44 = vadd.f32 %v1100_v50, %v1099_v38 }
 0x182   : > { %1102 = vst [vmem:[%s189_s15 + $0x1] sm:$0x1] %v1101_v44 }
 0x183   : > { %1656 = shalt.err (!%p1653_p10)
}
 0x184   : > { %s1657_s5 = scalar_lea.hbm %s2052_s28, 32  ;;  %s1661_s10 = scalar_lea.hbm %s2103_s3, 64 }
 0x185   : > { %p1658_p11 = scmp.ne.s32.totalorder %s2052_s28, %s1657_s5  ;;  %p1662_p0 = scmp.lt.u32.totalorder %s2052_s28, %s2103_s3 }
 0x186   : > { %p1663_p1 = scmp.lt.u32.totalorder %s1661_s10, %s1657_s5  ;;  %p1665_p3 = scmp.lt.u32.totalorder %s1657_s5, %s2052_s28 }
 0x187   : > { %p1659_p12 = pnand %p1658_p11, %p1793_p4 }
 0x188   : > { %p1664_p2 = por %p1663_p1, %p1662_p0 }
 0x189   : > { %p1660_p13 = pneg %p1659_p12 }
 0x18a   : > { %p1666_p5 = por %p1665_p3, %p1664_p2 }
 0x18c   : > { %p1667_p6 = pnand %p1666_p5, %p1660_p13 }
 0x18e   : > { %1670 = shalt.err (!%p1667_p6)
}
 0x18f   : > { %1494 = dma.vmem_to_hbm [thread:$0]  (%p1793_p4), %s2054_s23, 32, %s2052_s28, %s1109_s29  }
 0x190 PF: > { %p1504_p7 = scmp.ge.s32.totalorder %s1725_s17, 2  ;;  %s1150_s21 = sand.u32 1, %s1705_s12  }
 0x191   : > { %s1151_s19 = scalar_lea.sflag [#allocation4], %s1150_s21 }
 0x192   : > { %p1498_p9 = pnand %p1504_p7, %p1800_p8 }
 0x194   : > { %1696 = dma.done.wait (!%p1498_p9), %s1151_s19, 2048  }
 0x195   : > { %1698 = vsyncadd (!%p1498_p9), %s1151_s19, 4294965248  ;;  %s1160_s15 = scalar_lea.sflag [#allocation6], %s1150_s21 }
 0x196   : > { %1700 = dma.done.wait (!%p1498_p9), %s1160_s15, 32  }
 0x197   : > { %1702 = vsyncadd (!%p1498_p9), %s1160_s15, 4294967264  ;;  %s20_s17 = sadd.s32 1, %s1725_s17   ;;  %s2106_s12 = smov %s1709_s13 }
 0x198   : > { %p17_p10 = scmp.ge.s32.totalorder %s20_s17, 4   ;;  %s2107_s13 = smov %s1713_s14 }
 0x199   : > { %s2108_s14 = smov %s1806_s25  ;;  %s2109_s15 = smov %s1721_s16 }
 0x19a   : > { %s2110_s16 = smov %s2112_s20  ;;  %19 = sbr.rel (!%p17_p10) target bundleno = 6 (0x6), region = 88 }
 0x1a1   :  { %1165 = vsyncpa [#allocation4], 1 }
 0x1a2   :  { %1167 = vsyncpa [#allocation4 + $0x1], 1 }
 0x1a3   :  { %1168 = vsyncpa [#allocation6], 1 }
 0x1a4   :  { %1170 = vsyncpa [#allocation6 + $0x1], 1 }

</bundles_post_ra>
